<compile_context>
chip_gen: v5e
topology: v5e:2x2
jax: 0.10.0
libtpu: 0.0.40
codegen_flags: <defaults>
</compile_context>

<pallas_src>
import math

import jax
import jax.numpy as jnp
from jax.experimental import pallas as pl
from jax.experimental.pallas import tpu as pltpu

LN_EPS = 1e-5
LANE = 128          # lane width (last dim granularity)
SUBLANE_BF16 = 16   # bf16 sublane granularity (second-to-last dim)


def _round_up(n, m):
    return ((n + m - 1) // m) * m


# ----------------------------- fused kernel --------------------------------


def _make_fused_mlp_kernel(num_layers, hidden_dim, apelu_alpha, apelu_beta):
    """Build the fused MLP kernel with compile-time-constant APELU params."""
    alpha = float(apelu_alpha)
    beta = float(apelu_beta)
    fold_beta = (beta == 1.0)                 # module default -> drop one full-tile mul
    inv_h = 1.0 / float(hidden_dim)           # LN statistics over the REAL hidden dim
    neg_inf = float("-inf")

    def kernel(*refs):
        # refs layout: x, then per layer:
        #   hidden layer: w_i (bf16), vec_i (f32, rows = [bias, gamma, beta])
        #   last layer  : w_i (bf16), b_i   (f32, (1, out_pad))
        # final ref: out
        o_ref = refs[-1]
        h = refs[0][...]                              # bf16 (tb, Din_pad)
        idx = 1
        for i in range(num_layers):
            w = refs[idx][...]                        # bf16 (in_pad, out_pad)
            idx += 1
            if i != num_layers - 1:
                vec = refs[idx][...]                  # f32 (3, H_pad): bias/gamma/beta
                idx += 1
                b = vec[0:1, :]
                g = vec[1:2, :]
                bt = vec[2:3, :]

                y = jnp.dot(h, w, preferred_element_type=jnp.float32) + b

                # One-pass LayerNorm statistics over the real hidden_dim columns.
                # Padded columns of y are exactly 0 (zero weight cols, zero bias),
                # so sums over the padded width equal sums over hidden_dim.
                s1 = jnp.sum(y, axis=-1, keepdims=True)
                s2 = jnp.sum(y * y, axis=-1, keepdims=True)
                mean = s1 * inv_h
                var = jnp.maximum(s2 * inv_h - mean * mean, 0.0)   # clamp cancellation
                yn = (y - mean) * jax.lax.rsqrt(var + LN_EPS)
                yn = yn * g + bt                      # padded columns -> 0

                # APELU with constants folded in:
                #   yn >= 0 -> yn ; yn < 0 -> alpha*yn*exp(beta*yn)
                #   +inf passes through the >=0 branch; -inf needs an explicit
                #   passthrough (neg branch would give 0*inf = NaN); NaN propagates.
                if fold_beta:
                    neg = alpha * yn * jnp.exp(yn)
                else:
                    neg = alpha * yn * jnp.exp(beta * yn)
                act = jnp.where(yn >= 0, yn, neg)
                act = jnp.where(yn == neg_inf, yn, act)

                # Dropout (eval mode) -> identity
                h = act.astype(jnp.bfloat16)          # bf16 feed for next MXU pass
            else:
                b = refs[idx][...]                    # f32 (1, out_pad)
                idx += 1
                y = jnp.dot(h, w, preferred_element_type=jnp.float32) + b
                o_ref[...] = y.astype(o_ref.dtype)    # lane-dense store

    return kernel


# ----------------------------- wrapper --------------------------------------


def build_modern_mlp_forward(params, out_dtype=jnp.float32):
    """Returns forward(x) that runs the whole MLP in one pallas_call."""
    layers = params["layers"]
    norms = params["norms"]
    apelu_alpha, apelu_beta = params["apelu"]          # python floats (static)
    num_layers = len(layers)
    input_dim = layers[0][0].shape[0]
    output_dim = layers[-1][0].shape[1]
    hidden_dim = norms[0][0].shape[0] if norms else output_dim

    din_p = _round_up(input_dim, LANE)
    dh_p = _round_up(hidden_dim, LANE)
    dout_p = _round_up(output_dim, LANE)

    # --- pad & pre-cast parameters once (weights -> bf16, vectors -> f32) ---
    padded_params = []
    param_specs = []
    param_bytes = 0                                    # resident (Buffered(1)) footprint
    in_f_p = din_p
    for i, (w, b) in enumerate(layers):
        last = (i == num_layers - 1)
        out_f_p = dout_p if last else dh_p

        w_p = (jnp.zeros((in_f_p, out_f_p), jnp.bfloat16)
               .at[: w.shape[0], : w.shape[1]].set(w.astype(jnp.bfloat16)))
        padded_params.append(w_p)
        param_specs.append(
            pl.BlockSpec((in_f_p, out_f_p), lambda t: (0, 0),
                         pipeline_mode=pl.Buffered(1)))      # fetched once, 1 buffer
        param_bytes += in_f_p * out_f_p * 2

        if last:
            b_p = (jnp.zeros((1, out_f_p), jnp.float32)
                   .at[0, : b.shape[0]].set(b.astype(jnp.float32)))
            padded_params.append(b_p)
            param_specs.append(
                pl.BlockSpec((1, out_f_p), lambda t: (0, 0),
                             pipeline_mode=pl.Buffered(1)))
            param_bytes += 8 * out_f_p * 4                   # sublane-padded tile
        else:
            g, bt = norms[i]
            vec = jnp.zeros((3, dh_p), jnp.float32)          # rows: bias, gamma, beta
            vec = vec.at[0, : b.shape[0]].set(b.astype(jnp.float32))
            vec = vec.at[1, : g.shape[0]].set(g.astype(jnp.float32))
            vec = vec.at[2, : bt.shape[0]].set(bt.astype(jnp.float32))
            padded_params.append(vec)
            param_specs.append(
                pl.BlockSpec((3, dh_p), lambda t: (0, 0),
                             pipeline_mode=pl.Buffered(1)))
            param_bytes += 8 * dh_p * 4
        in_f_p = dh_p

    kernel = _make_fused_mlp_kernel(num_layers, hidden_dim, apelu_alpha, apelu_beta)
    out_itemsize = jnp.dtype(out_dtype).itemsize

    def _tile_bytes(t):
        # double-buffered x and out tiles + headroom for in-kernel f32 temporaries
        return (2 * t * din_p * 2          # x: bf16, 2 buffers
                + 2 * t * dout_p * out_itemsize
                + 6 * t * dh_p * 4)        # f32 intermediates (y, yn, act, ...)

    def _pick_tile(B):
        if B <= 128:
            return _round_up(B, SUBLANE_BF16)          # bf16 min tile is (16,128)
        tb = 512 if B >= 512 else (256 if B >= 256 else 128)
        while tb > 128 and param_bytes + _tile_bytes(tb) > (48 << 20):
            tb //= 2                                   # keep inside v7x's 64 MiB VMEM
        return tb

    def forward(x):
        B = x.shape[0]
        tb = _pick_tile(B)
        Bp = _round_up(B, tb)
        x_p = (jnp.zeros((Bp, din_p), jnp.bfloat16)
               .at[:B, :input_dim].set(x.astype(jnp.bfloat16)))

        # Explicit scoped-VMEM budget instead of the 16/32 MiB defaults.
        vmem_limit = int(1.25 * (param_bytes + _tile_bytes(tb))) + (4 << 20)
        vmem_limit = max(32 << 20, min(vmem_limit, 64 << 20))

        out_p = pl.pallas_call(
            kernel,
            out_shape=jax.ShapeDtypeStruct((Bp, dout_p), out_dtype),
            grid_spec=pltpu.PrefetchScalarGridSpec(
                num_scalar_prefetch=0,
                grid=(Bp // tb,),
                in_specs=[pl.BlockSpec((tb, din_p), lambda t: (t, 0))] + param_specs,
                out_specs=pl.BlockSpec((tb, dout_p), lambda t: (t, 0)),
            ),
            compiler_params=pltpu.CompilerParams(
                dimension_semantics=("parallel",),
                vmem_limit_bytes=vmem_limit,
            ),
        )(x_p, *padded_params)

        return out_p[:B, :output_dim]

    return forward


# ----------------------------- init & reference ------------------------------


def init_modern_mlp(key, input_dim, hidden_dim, output_dim, num_layers):
    """Deterministic init mimicking PyTorch nn.Linear defaults (U(-1/sqrt(in), 1/sqrt(in)))."""
    params = {"layers": [], "norms": []}
    in_f = input_dim
    for i in range(num_layers):
        out_f = output_dim if i == num_layers - 1 else hidden_dim
        key, kw, kb = jax.random.split(key, 3)
        bound = 1.0 / math.sqrt(in_f)
        w = jax.random.uniform(kw, (in_f, out_f), jnp.float32, -bound, bound)
        b = jax.random.uniform(kb, (out_f,), jnp.float32, -bound, bound)
        params["layers"].append((w, b))
        if i != num_layers - 1:
            params["norms"].append(
                (jnp.ones((hidden_dim,), jnp.float32),
                 jnp.zeros((hidden_dim,), jnp.float32)))
        in_f = hidden_dim
    # APELU parameters (alpha_init=0.01, beta_init=1.0) kept as python constants.
    params["apelu"] = (0.01, 1.0)
    return params


def modern_mlp_reference(params, x, *, match_kernel_precision=True):
    """Pure-JAX reference (PyTorch semantics, eval mode). If match_kernel_precision,
    the matmul inputs are cast to bf16 exactly like the kernel does."""
    alpha, beta = params["apelu"]
    layers = params["layers"]
    norms = params["norms"]
    n = len(layers)
    h = x.astype(jnp.float32)
    for i, (w, b) in enumerate(layers):
        if match_kernel_precision:
            y = jnp.dot(h.astype(jnp.bfloat16), w.astype(jnp.bfloat16),
                        preferred_element_type=jnp.float32) + b
        else:
            y = jnp.dot(h, w) + b
        if i != n - 1:
            g, bt = norms[i]
            mean = jnp.mean(y, axis=-1, keepdims=True)
            var = jnp.mean((y - mean) ** 2, axis=-1, keepdims=True)
            yn = (y - mean) * jax.lax.rsqrt(var + LN_EPS) * g + bt
            act = jnp.where(yn >= 0, yn, alpha * yn * jnp.exp(beta * yn))
            act = jnp.where(jnp.isinf(yn), yn, act)   # +/-inf passthrough (as in APELU)
            h = act
        else:
            h = y
    return h


# ----------------------------- main -----------------------------------------

if __name__ == "__main__":
    key = jax.random.PRNGKey(0)

    batch = 8
    input_dim = 16
    hidden_dim = 32
    output_dim = 8
    num_layers = 3

    key, kp, kx = jax.random.split(key, 3)
    params = init_modern_mlp(kp, input_dim, hidden_dim, output_dim, num_layers)
    x = jax.random.normal(kx, (batch, input_dim), dtype=jnp.float32)

    forward = jax.jit(build_modern_mlp_forward(params))
    out = jax.block_until_ready(forward(x))

    ref_matched = modern_mlp_reference(params, x, match_kernel_precision=True)
    ref_f32 = modern_mlp_reference(params, x, match_kernel_precision=False)

    assert out.shape == (batch, output_dim)
    assert bool(jnp.all(jnp.isfinite(out)))
    # Primary check: same precision recipe as the kernel (bf16 MXU inputs, f32 math).
    assert jnp.allclose(out, ref_matched, rtol=5e-3, atol=5e-3), \
        "mismatch vs matched-precision reference"
    # Sanity check against the full-f32 reference (bf16 matmul inputs => looser tol).
    assert jnp.allclose(out, ref_f32, rtol=1e-1, atol=1e-1), \
        "mismatch vs f32 reference"

    print("KERNEL_OK")
</pallas_src>

<mosaic_0001>
module attributes {stable_mosaic.version = 11 : i64} {
  func.func @kernel(%arg0: i32, %arg1: memref<16x128xbf16, #tpu.memory_space<vmem>>, %arg2: memref<128x128xbf16, #tpu.memory_space<vmem>>, %arg3: memref<3x128xf32, #tpu.memory_space<vmem>>, %arg4: memref<128x128xbf16, #tpu.memory_space<vmem>>, %arg5: memref<3x128xf32, #tpu.memory_space<vmem>>, %arg6: memref<128x128xbf16, #tpu.memory_space<vmem>>, %arg7: memref<1x128xf32, #tpu.memory_space<vmem>>, %arg8: memref<16x128xf32, #tpu.memory_space<vmem>>) attributes {dimension_semantics = [#tpu.dimension_semantics<parallel>], iteration_bounds = array<i64: 1>, scalar_prefetch = 0 : i64, scratch_operands = 0 : i64, tpu.core_type = #tpu.core_type<tc>, window_params = [{transform_indices = @transform_0, window_bounds = array<i64: 16, 128>}, {pipeline_mode = #tpu.pipeline_mode<synchronous>, transform_indices = @transform_1, window_bounds = array<i64: 128, 128>}, {pipeline_mode = #tpu.pipeline_mode<synchronous>, transform_indices = @transform_2, window_bounds = array<i64: 3, 128>}, {pipeline_mode = #tpu.pipeline_mode<synchronous>, transform_indices = @transform_3, window_bounds = array<i64: 128, 128>}, {pipeline_mode = #tpu.pipeline_mode<synchronous>, transform_indices = @transform_4, window_bounds = array<i64: 3, 128>}, {pipeline_mode = #tpu.pipeline_mode<synchronous>, transform_indices = @transform_5, window_bounds = array<i64: 128, 128>}, {pipeline_mode = #tpu.pipeline_mode<synchronous>, transform_indices = @transform_6, window_bounds = array<i64: 1, 128>}, {transform_indices = @transform_7, window_bounds = array<i64: 16, 128>}]} {
    %c0 = arith.constant 0 : index
    %c0_0 = arith.constant 0 : index
    %0 = vector.load %arg1[%c0, %c0_0] : memref<16x128xbf16, #tpu.memory_space<vmem>>, vector<16x128xbf16>
    %c0_1 = arith.constant 0 : index
    %c0_2 = arith.constant 0 : index
    %1 = vector.load %arg2[%c0_1, %c0_2] : memref<128x128xbf16, #tpu.memory_space<vmem>>, vector<128x128xbf16>
    %c0_3 = arith.constant 0 : index
    %c0_4 = arith.constant 0 : index
    %2 = vector.load %arg3[%c0_3, %c0_4] : memref<3x128xf32, #tpu.memory_space<vmem>>, vector<3x128xf32>
    %3 = vector.extract_strided_slice %2 {offsets = [0, 0], sizes = [1, 128], strides = [1, 1]} : vector<3x128xf32> to vector<1x128xf32>
    %4 = vector.extract_strided_slice %2 {offsets = [1, 0], sizes = [1, 128], strides = [1, 1]} : vector<3x128xf32> to vector<1x128xf32>
    %5 = vector.extract_strided_slice %2 {offsets = [2, 0], sizes = [1, 128], strides = [1, 1]} : vector<3x128xf32> to vector<1x128xf32>
    %cst = arith.constant dense<0.000000e+00> : vector<16x128xf32>
    %6 = tpu.matmul %0, %1, %cst {dimension_numbers = #tpu.dot_dimension_numbers<[1], [0], [0], [1], [0, 0, 1, 1], [], []>} : vector<16x128xbf16>, vector<128x128xbf16>, vector<16x128xf32> -> vector<16x128xf32>
    %7 = vector.broadcast %3 : vector<1x128xf32> to vector<16x128xf32>
    %8 = arith.addf %6, %7 : vector<16x128xf32>
    %cst_5 = arith.constant dense<0.000000e+00> : vector<16xf32>
    %9 = vector.multi_reduction <add>, %8, %cst_5 [1] : vector<16x128xf32> to vector<16xf32>
    %10 = vector.shape_cast %9 : vector<16xf32> to vector<16x1xf32>
    %11 = arith.mulf %8, %8 : vector<16x128xf32>
    %cst_6 = arith.constant dense<0.000000e+00> : vector<16xf32>
    %12 = vector.multi_reduction <add>, %11, %cst_6 [1] : vector<16x128xf32> to vector<16xf32>
    %13 = vector.shape_cast %12 : vector<16xf32> to vector<16x1xf32>
    %cst_7 = arith.constant 3.125000e-02 : f32
    %14 = vector.broadcast %cst_7 : f32 to vector<16x1xf32>
    %15 = arith.mulf %10, %14 : vector<16x1xf32>
    %cst_8 = arith.constant 3.125000e-02 : f32
    %16 = vector.broadcast %cst_8 : f32 to vector<16x1xf32>
    %17 = arith.mulf %13, %16 : vector<16x1xf32>
    %18 = arith.mulf %15, %15 : vector<16x1xf32>
    %19 = arith.subf %17, %18 : vector<16x1xf32>
    %cst_9 = arith.constant 0.000000e+00 : f32
    %20 = vector.broadcast %cst_9 : f32 to vector<16x1xf32>
    %21 = arith.maximumf %19, %20 : vector<16x1xf32>
    %22 = vector.broadcast %15 : vector<16x1xf32> to vector<16x128xf32>
    %23 = arith.subf %8, %22 : vector<16x128xf32>
    %cst_10 = arith.constant 9.99999974E-6 : f32
    %24 = vector.broadcast %cst_10 : f32 to vector<16x1xf32>
    %25 = arith.addf %21, %24 : vector<16x1xf32>
    %26 = math.rsqrt %25 : vector<16x1xf32>
    %27 = vector.broadcast %26 : vector<16x1xf32> to vector<16x128xf32>
    %28 = arith.mulf %23, %27 : vector<16x128xf32>
    %29 = vector.broadcast %4 : vector<1x128xf32> to vector<16x128xf32>
    %30 = arith.mulf %28, %29 : vector<16x128xf32>
    %31 = vector.broadcast %5 : vector<1x128xf32> to vector<16x128xf32>
    %32 = arith.addf %30, %31 : vector<16x128xf32>
    %cst_11 = arith.constant 0.00999999977 : f32
    %33 = vector.broadcast %cst_11 : f32 to vector<16x128xf32>
    %34 = arith.mulf %33, %32 : vector<16x128xf32>
    %35 = math.exp %32 : vector<16x128xf32>
    %36 = arith.mulf %34, %35 : vector<16x128xf32>
    %cst_12 = arith.constant 0.000000e+00 : f32
    %37 = vector.broadcast %cst_12 : f32 to vector<16x128xf32>
    %38 = arith.cmpf oge, %32, %37 : vector<16x128xf32>
    %39 = arith.select %38, %32, %36 : vector<16x128xi1>, vector<16x128xf32>
    %cst_13 = arith.constant 0xFF800000 : f32
    %40 = vector.broadcast %cst_13 : f32 to vector<16x128xf32>
    %41 = arith.cmpf oeq, %32, %40 : vector<16x128xf32>
    %42 = arith.select %41, %32, %39 : vector<16x128xi1>, vector<16x128xf32>
    %43 = arith.truncf %42 : vector<16x128xf32> to vector<16x128xbf16>
    %c0_14 = arith.constant 0 : index
    %c0_15 = arith.constant 0 : index
    %44 = vector.load %arg4[%c0_14, %c0_15] : memref<128x128xbf16, #tpu.memory_space<vmem>>, vector<128x128xbf16>
    %c0_16 = arith.constant 0 : index
    %c0_17 = arith.constant 0 : index
    %45 = vector.load %arg5[%c0_16, %c0_17] : memref<3x128xf32, #tpu.memory_space<vmem>>, vector<3x128xf32>
    %46 = vector.extract_strided_slice %45 {offsets = [0, 0], sizes = [1, 128], strides = [1, 1]} : vector<3x128xf32> to vector<1x128xf32>
    %47 = vector.extract_strided_slice %45 {offsets = [1, 0], sizes = [1, 128], strides = [1, 1]} : vector<3x128xf32> to vector<1x128xf32>
    %48 = vector.extract_strided_slice %45 {offsets = [2, 0], sizes = [1, 128], strides = [1, 1]} : vector<3x128xf32> to vector<1x128xf32>
    %cst_18 = arith.constant dense<0.000000e+00> : vector<16x128xf32>
    %49 = tpu.matmul %43, %44, %cst_18 {dimension_numbers = #tpu.dot_dimension_numbers<[1], [0], [0], [1], [0, 0, 1, 1], [], []>} : vector<16x128xbf16>, vector<128x128xbf16>, vector<16x128xf32> -> vector<16x128xf32>
    %50 = vector.broadcast %46 : vector<1x128xf32> to vector<16x128xf32>
    %51 = arith.addf %49, %50 : vector<16x128xf32>
    %cst_19 = arith.constant dense<0.000000e+00> : vector<16xf32>
    %52 = vector.multi_reduction <add>, %51, %cst_19 [1] : vector<16x128xf32> to vector<16xf32>
    %53 = vector.shape_cast %52 : vector<16xf32> to vector<16x1xf32>
    %54 = arith.mulf %51, %51 : vector<16x128xf32>
    %cst_20 = arith.constant dense<0.000000e+00> : vector<16xf32>
    %55 = vector.multi_reduction <add>, %54, %cst_20 [1] : vector<16x128xf32> to vector<16xf32>
    %56 = vector.shape_cast %55 : vector<16xf32> to vector<16x1xf32>
    %cst_21 = arith.constant 3.125000e-02 : f32
    %57 = vector.broadcast %cst_21 : f32 to vector<16x1xf32>
    %58 = arith.mulf %53, %57 : vector<16x1xf32>
    %cst_22 = arith.constant 3.125000e-02 : f32
    %59 = vector.broadcast %cst_22 : f32 to vector<16x1xf32>
    %60 = arith.mulf %56, %59 : vector<16x1xf32>
    %61 = arith.mulf %58, %58 : vector<16x1xf32>
    %62 = arith.subf %60, %61 : vector<16x1xf32>
    %cst_23 = arith.constant 0.000000e+00 : f32
    %63 = vector.broadcast %cst_23 : f32 to vector<16x1xf32>
    %64 = arith.maximumf %62, %63 : vector<16x1xf32>
    %65 = vector.broadcast %58 : vector<16x1xf32> to vector<16x128xf32>
    %66 = arith.subf %51, %65 : vector<16x128xf32>
    %cst_24 = arith.constant 9.99999974E-6 : f32
    %67 = vector.broadcast %cst_24 : f32 to vector<16x1xf32>
    %68 = arith.addf %64, %67 : vector<16x1xf32>
    %69 = math.rsqrt %68 : vector<16x1xf32>
    %70 = vector.broadcast %69 : vector<16x1xf32> to vector<16x128xf32>
    %71 = arith.mulf %66, %70 : vector<16x128xf32>
    %72 = vector.broadcast %47 : vector<1x128xf32> to vector<16x128xf32>
    %73 = arith.mulf %71, %72 : vector<16x128xf32>
    %74 = vector.broadcast %48 : vector<1x128xf32> to vector<16x128xf32>
    %75 = arith.addf %73, %74 : vector<16x128xf32>
    %cst_25 = arith.constant 0.00999999977 : f32
    %76 = vector.broadcast %cst_25 : f32 to vector<16x128xf32>
    %77 = arith.mulf %76, %75 : vector<16x128xf32>
    %78 = math.exp %75 : vector<16x128xf32>
    %79 = arith.mulf %77, %78 : vector<16x128xf32>
    %cst_26 = arith.constant 0.000000e+00 : f32
    %80 = vector.broadcast %cst_26 : f32 to vector<16x128xf32>
    %81 = arith.cmpf oge, %75, %80 : vector<16x128xf32>
    %82 = arith.select %81, %75, %79 : vector<16x128xi1>, vector<16x128xf32>
    %cst_27 = arith.constant 0xFF800000 : f32
    %83 = vector.broadcast %cst_27 : f32 to vector<16x128xf32>
    %84 = arith.cmpf oeq, %75, %83 : vector<16x128xf32>
    %85 = arith.select %84, %75, %82 : vector<16x128xi1>, vector<16x128xf32>
    %86 = arith.truncf %85 : vector<16x128xf32> to vector<16x128xbf16>
    %c0_28 = arith.constant 0 : index
    %c0_29 = arith.constant 0 : index
    %87 = vector.load %arg6[%c0_28, %c0_29] : memref<128x128xbf16, #tpu.memory_space<vmem>>, vector<128x128xbf16>
    %c0_30 = arith.constant 0 : index
    %c0_31 = arith.constant 0 : index
    %88 = vector.load %arg7[%c0_30, %c0_31] : memref<1x128xf32, #tpu.memory_space<vmem>>, vector<1x128xf32>
    %cst_32 = arith.constant dense<0.000000e+00> : vector<16x128xf32>
    %89 = tpu.matmul %86, %87, %cst_32 {dimension_numbers = #tpu.dot_dimension_numbers<[1], [0], [0], [1], [0, 0, 1, 1], [], []>} : vector<16x128xbf16>, vector<128x128xbf16>, vector<16x128xf32> -> vector<16x128xf32>
    %90 = vector.broadcast %88 : vector<1x128xf32> to vector<16x128xf32>
    %91 = arith.addf %89, %90 : vector<16x128xf32>
    %c0_33 = arith.constant 0 : index
    %c0_34 = arith.constant 0 : index
    %92 = vector.load %arg8[%c0_33, %c0_34] : memref<16x128xf32, #tpu.memory_space<vmem>>, vector<16x128xf32>
    tpu.vector_store %arg8[%c0_33, %c0_34], %91 {strides = array<i32>} : memref<16x128xf32, #tpu.memory_space<vmem>>, vector<16x128xf32>,
    return
  }
  func.func @transform_0(%arg0: i32) -> (i32, i32) {
    %c0_i32 = arith.constant 0 : i32
    %c0_i32_0 = arith.constant 0 : i32
    return %arg0, %c0_i32 : i32, i32
  }
  func.func @transform_1(%arg0: i32) -> (i32, i32) {
    %c0_i32 = arith.constant 0 : i32
    %c0_i32_0 = arith.constant 0 : i32
    %c0_i32_1 = arith.constant 0 : i32
    return %c0_i32, %c0_i32_0 : i32, i32
  }
  func.func @transform_2(%arg0: i32) -> (i32, i32) {
    %c0_i32 = arith.constant 0 : i32
    %c0_i32_0 = arith.constant 0 : i32
    %c0_i32_1 = arith.constant 0 : i32
    return %c0_i32, %c0_i32_0 : i32, i32
  }
  func.func @transform_3(%arg0: i32) -> (i32, i32) {
    %c0_i32 = arith.constant 0 : i32
    %c0_i32_0 = arith.constant 0 : i32
    %c0_i32_1 = arith.constant 0 : i32
    return %c0_i32, %c0_i32_0 : i32, i32
  }
  func.func @transform_4(%arg0: i32) -> (i32, i32) {
    %c0_i32 = arith.constant 0 : i32
    %c0_i32_0 = arith.constant 0 : i32
    %c0_i32_1 = arith.constant 0 : i32
    return %c0_i32, %c0_i32_0 : i32, i32
  }
  func.func @transform_5(%arg0: i32) -> (i32, i32) {
    %c0_i32 = arith.constant 0 : i32
    %c0_i32_0 = arith.constant 0 : i32
    %c0_i32_1 = arith.constant 0 : i32
    return %c0_i32, %c0_i32_0 : i32, i32
  }
  func.func @transform_6(%arg0: i32) -> (i32, i32) {
    %c0_i32 = arith.constant 0 : i32
    %c0_i32_0 = arith.constant 0 : i32
    %c0_i32_1 = arith.constant 0 : i32
    return %c0_i32, %c0_i32_0 : i32, i32
  }
  func.func @transform_7(%arg0: i32) -> (i32, i32) {
    %c0_i32 = arith.constant 0 : i32
    %c0_i32_0 = arith.constant 0 : i32
    return %arg0, %c0_i32 : i32, i32
  }
}

</mosaic_0001>

<bundles_post_ra>
// kernel: forward.1
= control target key start
LH: loop header
LB: loop body
LE: loop exit
PB: predicated region body
PF: predicated region fallthrough
CT: control target
= control target key end

     0   :  { %12 = vsyncpa [#allocation3], 0  ;;  %s786_s0 = inlined_call_operand.vmem [shape: bf16[16,128], index: 0, kind: input, shape index: {}]   ;;  %s787_s1 = inlined_call_operand.hbm [shape: bf16[128,128], index: 1, kind: input, shape index: {}]   ;;  %s788_s2 = inlined_call_operand.vmem [shape: f32[3,128], index: 2, kind: input, shape index: {}]   ;;  %s789_s3 = inlined_call_operand.hbm [shape: bf16[128,128], index: 3, kind: input, shape index: {}]   ;;  %s790_s4 = inlined_call_operand.vmem [shape: f32[3,128], index: 4, kind: input, shape index: {}]   ;;  %s791_s5 = inlined_call_operand.hbm [shape: bf16[128,128], index: 5, kind: input, shape index: {}]   ;;  %s792_s6 = inlined_call_operand.vmem [shape: f32[1,128], index: 6, kind: input, shape index: {}]   ;;  %s793_s7 = inlined_call_operand.vmem [shape: f32[16,128], index: 7, kind: output, shape index: {}]  }
   0x1   :  { %13 = vsyncpa [#allocation5], 0  ;;  %s35_s26 = sshll.u32 %s789_s3, 4  ;;  %s692_s27 = smov [#allocation4]   ;;  %s36_s26 = int_to_ptr.hbm [resolvable:$true] %s35_s26 }
   0x2   :  { %s37_s28 = sshll.u32 %s692_s27, 4  ;;  %s20_s8 = sshll.u32 %s787_s1, 4  ;;  %s38_s28 = int_to_ptr.vmem [resolvable:$true] %s37_s28  ;;  %s21_s8 = int_to_ptr.hbm [resolvable:$true] %s20_s8 }
   0x3   :  { %s693_s9 = smov 64   ;;  %s694_s10 = smov 4  }
   0x4   :  { %43 = dma.hbm_to_vmem [thread:$0]  %s36_s26, 1024, %s38_s28, [#allocation5], %s693_s9, %s693_s9, %s694_s10  }
   0x5   :  { %s695_s11 = smov [#allocation2]   ;;  %s50_s15 = sshll.u32 %s791_s5, 4  ;;  %s51_s15 = int_to_ptr.hbm [resolvable:$true] %s50_s15 }
   0x6   :  { %s22_s12 = sshll.u32 %s695_s11, 4  ;;  %s696_s3 = smov [#allocation6]   ;;  %s23_s12 = int_to_ptr.vmem [resolvable:$true] %s22_s12 }
   0x7   :  { %28 = dma.hbm_to_vmem [thread:$0]  %s21_s8, 1024, %s23_s12, [#allocation3], %s693_s9, %s693_s9, %s694_s10  }
   0x8   :  { %s52_s16 = sshll.u32 %s696_s3, 4  ;;  %s53_s16 = int_to_ptr.vmem [resolvable:$true] %s52_s16 }
   0x9   :  { %58 = dma.hbm_to_vmem [thread:$0]  %s51_s15, 1024, %s53_s16, [#allocation5], %s693_s9, %s693_s9, %s694_s10  }
   0xa   :  { %688 = dma.done.wait [#allocation3], 1024  }
   0xb   :  { %689 = vsyncadd [#allocation3], 4294966272 }
   0xc   :  { %690 = dma.done.wait [#allocation5], 2048  }
   0xd   :  { %691 = vsyncadd [#allocation5], 4294965248  ;;  %v577_v0 = vld [vmem:[#allocation2 + $0x38] sm:$0xff]  ;;  %v576_v1 = vld [vmem:[#allocation2 + $0x30] sm:$0xff] }
   0xe   :  { %147 = vmatpush.bf16.msra.mxu0 %v577_v0  ;;  %v575_v2 = vld [vmem:[#allocation2 + $0x28] sm:$0xff]  ;;  %v574_v3 = vld [vmem:[#allocation2 + $0x20] sm:$0xff]  ;;  %v573_v4 = vld [vmem:[#allocation2 + $0x18] sm:$0xff] }
   0xf   :  { %v572_v5 = vld [vmem:[#allocation2 + $0x10] sm:$0xff]  ;;  %v571_v6 = vld [vmem:[#allocation2 + $0x8] sm:$0xff]  ;;  %v570_v7 = vld [vmem:[#allocation2] sm:$0xff] }
  0x10   :  { %v569_v8 = vld [vmem:[%s786_s0] sm:$0xff]  ;;  %v585_v17 = vld [vmem:[#allocation4 + $0x38] sm:$0xff]  ;;  %v584_v18 = vld [vmem:[#allocation4 + $0x30] sm:$0xff] }
  0x11   :  { %v752_v9 = vld [vmem:[%s788_s2] sm:$0x7]  ;;  %296 = vmatpush.bf16.msra.mxu1 %v585_v17  ;;  %v583_v22 = vld [vmem:[#allocation4 + $0x28] sm:$0xff]  ;;  %v581_v32 = vld [vmem:[#allocation4 + $0x18] sm:$0xff] }
  0x12   :  { %148 = vmatpush.bf16.msra.mxu0 %v576_v1  ;;  %v92_v10 = vperm.slane %v752_v9, 0  ;;  %v582_v26 = vld [vmem:[#allocation4 + $0x20] sm:$0xff]  ;;  %v580_v35 = vld [vmem:[#allocation4 + $0x10] sm:$0xff]  ;;  %v579_v38 = vld [vmem:[#allocation4 + $0x8] sm:$0xff]  ;;  %v207_v48 = vperm.slane %v752_v9, 1  ;;  %v210_v52 = vperm.slane %v752_v9, 2 }
  0x13   :  { %v578_v43 = vld [vmem:[#allocation4] sm:$0xff] }
  0x15   :  { %297 = vmatpush.bf16.msra.mxu1 %v584_v18 }
  0x16   :  { %149 = vmatpush.bf16.msra.mxu0 %v575_v2 }
  0x19   :  { %298 = vmatpush.bf16.msra.mxu1 %v583_v22  ;;  %v593_v22 = vld [vmem:[#allocation6 + $0x38] sm:$0xff] }
  0x1a   :  { %150 = vmatpush.bf16.msra.mxu0 %v574_v3  ;;  %447 = vmatpush.bf16.msra.mxu2 %v593_v22 }
  0x1d   :  { %299 = vmatpush.bf16.msra.mxu1 %v582_v26 }
  0x1e   :  { %151 = vmatpush.bf16.msra.mxu0 %v573_v4 }
  0x21   :  { %300 = vmatpush.bf16.msra.mxu1 %v581_v32 }
  0x22   :  { %152 = vmatpush.bf16.msra.mxu0 %v572_v5 }
  0x25   :  { %301 = vmatpush.bf16.msra.mxu1 %v580_v35 }
  0x26   :  { %153 = vmatpush.bf16.msra.mxu0 %v571_v6 }
  0x29   :  { %302 = vmatpush.bf16.msra.mxu1 %v579_v38 }
  0x2a   :  { %154 = vmatpush.bf16.msra.mxu0 %v570_v7 }
  0x2d   :  { %155 = vmatmul.bf16.vlgmr.msra.gmra.mxu0 %v569_v8  ;;  %303 = vmatpush.bf16.msra.mxu1 %v578_v43  ;;  %v587_v43 = vld [vmem:[#allocation6 + $0x8] sm:$0xff] }
  0xaa   :  { %v156_v11 = vpop.f32.mrf.mxu0 }
  0xab   :  { %v157_v12 = vadd.f32 %v156_v11, %v92_v10 }
  0xad   :  { %161 = vadd.xlane.f32.xlu0 %v157_v12  ;;  %v165_v13 = vmul.f32 %v157_v12, %v157_v12 }
  0xaf   :  { %167 = vadd.xlane.f32.xlu1 %v165_v13 }
  0xb2   :  { %v158_v14 = vpop.f32.mrf.mxu0 }
  0xb3   :  { %v755_v15 = vadd.f32 %v158_v14, %v92_v10  ;;  %v766_v14 = vld [vmem:[%s790_s4] sm:$0x7] }
  0xb5   :  { %163 = vadd.xlane.f32.xlu0 %v755_v15  ;;  %v166_v16 = vmul.f32 %v755_v15, %v755_v15 }
  0xb7   :  { %169 = vadd.xlane.f32.xlu1 %v166_v16 }
 0x120   :  { %v162_v19 = vpop.xlane.xlu0 %161 }
 0x121   :  { %v171_v20 = vmul.f32 0.03125, %v162_v19 }
 0x122   :  { %v168_v21 = vpop.xlane.xlu1 %167 }
 0x123   :  { %v175_v23 = vmul.f32 %v171_v20, %v171_v20  ;;  %v173_v24 = vmul.f32 0.03125, %v168_v21  ;;  %v181_v49 = vsub.f32 %v157_v12, %v171_v20 }
 0x125   :  { %v177_v25 = vsub.f32 %v173_v24, %v175_v23  ;;  %v592_v23 = vld [vmem:[#allocation6 + $0x30] sm:$0xff] }
 0x126   :  { %448 = vmatpush.bf16.msra.mxu2 %v592_v23 }
 0x127   :  { %v179_v27 = vmax.f32 %v177_v25, 0.0 }
 0x128   :  { %v164_v28 = vpop.xlane.xlu0 %163 }
 0x129   :  { %v183_v29 = vadd.f32 1e-05, %v179_v27  ;;  %v172_v30 = vmul.f32 0.03125, %v164_v28  ;;  %v591_v27 = vld [vmem:[#allocation6 + $0x28] sm:$0xff] }
 0x12a   :  { %v170_v31 = vpop.xlane.xlu1 %169  ;;  %449 = vmatpush.bf16.msra.mxu2 %v591_v27 }
 0x12b   :  { %600 = vrsqrt.f32 %v183_v29  ;;  %v176_v33 = vmul.f32 %v172_v30, %v172_v30  ;;  %v174_v34 = vmul.f32 0.03125, %v170_v31  ;;  %vm191_vm1 = vweird.f32 %v183_v29  ;;  %v590_v31 = vld [vmem:[#allocation6 + $0x20] sm:$0xff] }
 0x12c   :  { %v182_v60 = vsub.f32 %v755_v15, %v172_v30  ;;  %v247_v15 = vperm.slane %v766_v14, 0 }
 0x12d   :  { %v178_v36 = vsub.f32 %v174_v34, %v176_v33 }
 0x12e   :  { %450 = vmatpush.bf16.msra.mxu2 %v590_v31 }
 0x12f   :  { %v180_v37 = vmax.f32 %v178_v36, 0.0 }
 0x131   :  { %v601_v39 = vpop.eup %600  ;;  %v184_v41 = vadd.f32 1e-05, %v180_v37  ;;  %v589_v37 = vld [vmem:[#allocation6 + $0x18] sm:$0xff] }
 0x132   :  { %v186_v40 = vmul.f32 %v601_v39, %v183_v29  ;;  %vm192_vm0 = vweird.f32 %v601_v39  ;;  %451 = vmatpush.bf16.msra.mxu2 %v589_v37 }
 0x133   :  { %602 = vrsqrt.f32 %v184_v41  ;;  %vm193_vm2 = vmor %vm191_vm1, %vm192_vm0  ;;  %vm201_vm4 = vweird.f32 %v184_v41 }
 0x134   :  { %v187_v42 = vmul.f32 %v601_v39, %v186_v40  ;;  %v588_v40 = vld [vmem:[#allocation6 + $0x10] sm:$0xff] }
 0x136   :  { %v188_v44 = vmul.f32 0.5, %v187_v42  ;;  %452 = vmatpush.bf16.msra.mxu2 %v588_v40 }
 0x138   :  { %v189_v45 = vsub.f32 1.5, %v188_v44 }
 0x139   :  { %v603_v46 = vpop.eup %602 }
 0x13a   :  { %v190_v47 = vmul.f32 %v601_v39, %v189_v45  ;;  %v196_v50 = vmul.f32 %v603_v46, %v184_v41  ;;  %vm202_vm3 = vweird.f32 %v603_v46  ;;  %453 = vmatpush.bf16.msra.mxu2 %v587_v43 }
 0x13b   :  { %vm203_vm5 = vmor %vm201_vm4, %vm202_vm3 }
 0x13c   :  { %v194_v51 = vsel %vm193_vm2, %v601_v39, %v190_v47  ;;  %v197_v54 = vmul.f32 %v603_v46, %v196_v50 }
 0x13d   :  { %v205_v53 = vmul.f32 %v194_v51, %v181_v49 }
 0x13e   :  { %v198_v56 = vmul.f32 0.5, %v197_v54 }
 0x13f   :  { %v208_v55 = vmul.f32 %v207_v48, %v205_v53  ;;  %v356_v53 = vperm.slane %v766_v14, 1 }
 0x140   :  { %v199_v58 = vsub.f32 1.5, %v198_v56 }
 0x141   :  { %v211_v57 = vadd.f32 %v210_v52, %v208_v55 }
 0x142   :  { %v200_v59 = vmul.f32 %v603_v46, %v199_v58 }
 0x143   :  { %v215_v61 = vmul.f32 1.442695, %v211_v57  ;;  %v213_v4 = vmul.f32 0.01, %v211_v57  ;;  %vm221_vm6 = vcmp.ge.f32.partialorder %v211_v57, 0.0  ;;  %vm225_vm8 = vcmp.eq.f32.partialorder %v211_v57, -inf }
 0x144   :  { %v204_v62 = vsel %vm203_vm5, %v603_v46, %v200_v59 }
 0x145   :  { %v206_v63 = vmul.f32 %v204_v62, %v182_v60  ;;  %604 = vpow2.f32 %v215_v61 }
 0x147   :  { %v209_v0 = vmul.f32 %v207_v48, %v206_v63  ;;  %v586_v48 = vld [vmem:[#allocation6] sm:$0xff] }
 0x148   :  { %454 = vmatpush.bf16.msra.mxu2 %v586_v48 }
 0x149   :  { %v212_v1 = vadd.f32 %v210_v52, %v209_v0 }
 0x14b   :  { %v217_v2 = vmul.f32 1.442695, %v212_v1  ;;  %v605_v3 = vpop.eup %604  ;;  %v214_v6 = vmul.f32 0.01, %v212_v1  ;;  %vm222_vm7 = vcmp.ge.f32.partialorder %v212_v1, 0.0  ;;  %vm226_vm9 = vcmp.eq.f32.partialorder %v212_v1, -inf }
 0x14c   :  { %v219_v5 = vmul.f32 %v605_v3, %v213_v4 }
 0x14d   :  { %606 = vpow2.f32 %v217_v2 }
 0x14e   :  { %v223_v9 = vsel %vm221_vm6, %v211_v57, %v219_v5 }
 0x14f   :  { %v227_v11 = vsel %vm225_vm8, %v211_v57, %v223_v9  ;;  %v359_v57 = vperm.slane %v766_v14, 2 }
 0x153   :  { %v607_v7 = vpop.eup %606 }
 0x154   :  { %v220_v8 = vmul.f32 %v607_v7, %v214_v6 }
 0x156   :  { %v224_v10 = vsel %vm222_vm7, %v212_v1, %v220_v8 }
 0x157   :  { %v228_v12 = vsel %vm226_vm9, %v212_v1, %v224_v10 }
 0x158   :  { %v229_v13 = vpack.c.bf16 %v228_v12, %v227_v11 }
 0x15a   :  { %304 = vmatmul.bf16.vlgmr.msra.gmra.mxu1 %v229_v13 }
 0x1d7   :  { %v305_v16 = vpop.f32.mrf.mxu1 }
 0x1d8   :  { %v306_v17 = vadd.f32 %v305_v16, %v247_v15 }
 0x1da   :  { %310 = vadd.xlane.f32.xlu2 %v306_v17  ;;  %v314_v18 = vmul.f32 %v306_v17, %v306_v17 }
 0x1dc   :  { %316 = vadd.xlane.f32.xlu0 %v314_v18 }
 0x1df   :  { %v307_v19 = vpop.f32.mrf.mxu1 }
 0x1e0   :  { %v769_v20 = vadd.f32 %v307_v19, %v247_v15  ;;  %v599_v19 = vld [vmem:[%s792_s6] ss:$0 sm:$0xff] }
 0x1e2   :  { %312 = vadd.xlane.f32.xlu2 %v769_v20  ;;  %v315_v21 = vmul.f32 %v769_v20, %v769_v20 }
 0x1e4   :  { %318 = vadd.xlane.f32.xlu1 %v315_v21 }
 0x24d   :  { %v311_v24 = vpop.xlane.xlu2 %310 }
 0x24e   :  { %v320_v25 = vmul.f32 0.03125, %v311_v24 }
 0x24f   :  { %v317_v26 = vpop.xlane.xlu0 %316 }
 0x250   :  { %v324_v28 = vmul.f32 %v320_v25, %v320_v25  ;;  %v322_v29 = vmul.f32 0.03125, %v317_v26  ;;  %v330_v54 = vsub.f32 %v306_v17, %v320_v25 }
 0x252   :  { %v326_v30 = vsub.f32 %v322_v29, %v324_v28 }
 0x254   :  { %v328_v32 = vmax.f32 %v326_v30, 0.0 }
 0x255   :  { %v313_v33 = vpop.xlane.xlu2 %312 }
 0x256   :  { %v332_v34 = vadd.f32 1e-05, %v328_v32  ;;  %v321_v35 = vmul.f32 0.03125, %v313_v33 }
 0x257   :  { %v319_v36 = vpop.xlane.xlu1 %318 }
 0x258   :  { %608 = vrsqrt.f32 %v332_v34  ;;  %v325_v38 = vmul.f32 %v321_v35, %v321_v35  ;;  %v323_v39 = vmul.f32 0.03125, %v319_v36  ;;  %vm340_vm11 = vweird.f32 %v332_v34 }
 0x259   :  { %v331_v1 = vsub.f32 %v769_v20, %v321_v35 }
 0x25a   :  { %v327_v41 = vsub.f32 %v323_v39, %v325_v38 }
 0x25c   :  { %v329_v42 = vmax.f32 %v327_v41, 0.0 }
 0x25e   :  { %v609_v44 = vpop.eup %608  ;;  %v333_v46 = vadd.f32 1e-05, %v329_v42 }
 0x25f   :  { %v335_v45 = vmul.f32 %v609_v44, %v332_v34  ;;  %vm341_vm10 = vweird.f32 %v609_v44 }
 0x260   :  { %610 = vrsqrt.f32 %v333_v46  ;;  %vm342_vm12 = vmor %vm340_vm11, %vm341_vm10  ;;  %vm350_vm14 = vweird.f32 %v333_v46 }
 0x261   :  { %v336_v47 = vmul.f32 %v609_v44, %v335_v45 }
 0x263   :  { %v337_v49 = vmul.f32 0.5, %v336_v47 }
 0x265   :  { %v338_v50 = vsub.f32 1.5, %v337_v49 }
 0x266   :  { %v611_v51 = vpop.eup %610 }
 0x267   :  { %v339_v52 = vmul.f32 %v609_v44, %v338_v50  ;;  %v345_v55 = vmul.f32 %v611_v51, %v333_v46  ;;  %vm351_vm13 = vweird.f32 %v611_v51 }
 0x268   :  { %vm352_vm15 = vmor %vm350_vm14, %vm351_vm13 }
 0x269   :  { %v343_v56 = vsel %vm342_vm12, %v609_v44, %v339_v52  ;;  %v346_v59 = vmul.f32 %v611_v51, %v345_v55 }
 0x26a   :  { %v354_v58 = vmul.f32 %v343_v56, %v330_v54 }
 0x26b   :  { %v347_v61 = vmul.f32 0.5, %v346_v59 }
 0x26c   :  { %v357_v60 = vmul.f32 %v356_v53, %v354_v58 }
 0x26d   :  { %v348_v63 = vsub.f32 1.5, %v347_v61 }
 0x26e   :  { %v360_v62 = vadd.f32 %v359_v57, %v357_v60 }
 0x26f   :  { %v349_v0 = vmul.f32 %v611_v51, %v348_v63 }
 0x270   :  { %v364_v2 = vmul.f32 1.442695, %v360_v62  ;;  %v362_v9 = vmul.f32 0.01, %v360_v62  ;;  %vm370_vm0 = vcmp.ge.f32.partialorder %v360_v62, 0.0  ;;  %vm374_vm2 = vcmp.eq.f32.partialorder %v360_v62, -inf }
 0x271   :  { %v353_v3 = vsel %vm352_vm15, %v611_v51, %v349_v0 }
 0x272   :  { %v355_v4 = vmul.f32 %v353_v3, %v331_v1  ;;  %612 = vpow2.f32 %v364_v2 }
 0x274   :  { %v358_v5 = vmul.f32 %v356_v53, %v355_v4 }
 0x276   :  { %v361_v6 = vadd.f32 %v359_v57, %v358_v5 }
 0x278   :  { %v366_v7 = vmul.f32 1.442695, %v361_v6  ;;  %v613_v8 = vpop.eup %612  ;;  %v363_v11 = vmul.f32 0.01, %v361_v6  ;;  %vm371_vm1 = vcmp.ge.f32.partialorder %v361_v6, 0.0  ;;  %vm375_vm3 = vcmp.eq.f32.partialorder %v361_v6, -inf }
 0x279   :  { %v368_v10 = vmul.f32 %v613_v8, %v362_v9 }
 0x27a   :  { %614 = vpow2.f32 %v366_v7 }
 0x27b   :  { %v372_v14 = vsel %vm370_vm0, %v360_v62, %v368_v10 }
 0x27c   :  { %v376_v16 = vsel %vm374_vm2, %v360_v62, %v372_v14 }
 0x280   :  { %v615_v12 = vpop.eup %614 }
 0x281   :  { %v369_v13 = vmul.f32 %v615_v12, %v363_v11 }
 0x283   :  { %v373_v15 = vsel %vm371_vm1, %v361_v6, %v369_v13 }
 0x284   :  { %v377_v17 = vsel %vm375_vm3, %v361_v6, %v373_v15 }
 0x285   :  { %v378_v18 = vpack.c.bf16 %v377_v17, %v376_v16 }
 0x287   :  { %455 = vmatmul.bf16.vlgmr.msra.gmra.mxu2 %v378_v18 }
 0x30a   :  { %v456_v20 = vpop.f32.mrf.mxu2 }
 0x30b   :  { %v457_v21 = vadd.f32 %v599_v19, %v456_v20 }
 0x30d   :  { %461 = vst [vmem:[%s793_s7] sm:$0xff] %v457_v21 }
 0x312   :  { %v458_v22 = vpop.f32.mrf.mxu2 }
 0x313   :  { %v459_v23 = vadd.f32 %v599_v19, %v458_v22 }
 0x315   :  { %462 = vst [vmem:[%s793_s7 + $0x8] sm:$0xff] %v459_v23 }
 0x316   :  { %467 = vsyncpa [#allocation3], 1 }
 0x317   :  { %468 = vsyncpa [#allocation5], 1 }

</bundles_post_ra>
